<compile_context>
chip_gen: v7x
topology: tpu7x:2x2x1
jax: 0.10.0
libtpu: 0.0.40
codegen_flags: <defaults>
</compile_context>

<pallas_src>
import functools

import jax
import jax.numpy as jnp
from jax.experimental import pallas as pl
from jax.experimental.pallas import tpu as pltpu

HIDDEN1 = 128
HIDDEN2 = 256
LANE = 128
NEG_BIG = -1e30  # baked into padded b3 lanes -> padded probs underflow to 0


def _round_up(x, m):
    return ((x + m - 1) // m) * m


# ---------------------------------------------------------------------------
# Kernel
# ---------------------------------------------------------------------------
def _policy_kernel(x_ref, w1_ref, b1_ref, w2_ref, b2_ref, w3_ref, b3_ref,
                   probs_ref, *, action_dim):
    # x arrives as f32; the bf16 cast is a free in-register VPU op.
    x = x_ref[...].astype(jnp.bfloat16)

    # Linear(state_dim -> 128) + ReLU  (bias/ReLU in f32)
    h1 = jnp.dot(x, w1_ref[...], preferred_element_type=jnp.float32)
    h1 = jnp.maximum(h1 + b1_ref[...], 0.0)

    # Linear(128 -> 256) + ReLU
    h2 = jnp.dot(h1.astype(jnp.bfloat16), w2_ref[...],
                 preferred_element_type=jnp.float32)
    h2 = jnp.maximum(h2 + b2_ref[...], 0.0)

    # Linear(256 -> action_dim_padded); padded W3 columns are 0 and padded b3
    # lanes are -1e30, so padded logits come out as -1e30 automatically.
    logits = jnp.dot(h2.astype(jnp.bfloat16), w3_ref[...],
                     preferred_element_type=jnp.float32) + b3_ref[...]

    # Numerically stable softmax over the lane-dense padded axis.
    m = jnp.max(logits, axis=-1, keepdims=True)
    e = jnp.exp(logits - m)               # padded lanes underflow to exactly 0
    denom = jnp.sum(e, axis=-1, keepdims=True)
    probs = e / denom                     # exact divide: rows sum to 1 (f32)

    # Narrow store: only the real action lanes go back to HBM.
    probs_ref[...] = probs[:, :action_dim].astype(probs_ref.dtype)


# ---------------------------------------------------------------------------
# One-time parameter preparation (outside the hot path)
# ---------------------------------------------------------------------------
def prepare_params(params):
    """Cast weights to bf16 and pre-pad the last layer to a 128-lane multiple."""
    w1, b1, w2, b2, w3, b3 = params
    action_dim = w3.shape[1]
    a_pad = _round_up(action_dim, LANE)
    if a_pad != action_dim:
        w3 = jnp.pad(w3, ((0, 0), (0, a_pad - action_dim)))  # zeros
        b3 = jnp.pad(b3, ((0, 0), (0, a_pad - action_dim)),
                     constant_values=NEG_BIG)                 # bake the mask in
    return dict(
        w1=w1.astype(jnp.bfloat16), b1=b1.astype(jnp.float32),
        w2=w2.astype(jnp.bfloat16), b2=b2.astype(jnp.float32),
        w3=w3.astype(jnp.bfloat16), b3=b3.astype(jnp.float32),
        action_dim=action_dim, action_dim_padded=a_pad,
    )


def _default_num_cores():
    # v5e / v6e: 1 TensorCore per chip; v7x: 2.  Only split a batch that fits
    # one tile when a second core actually exists.
    try:
        return max(1, int(getattr(jax.devices()[0], "num_cores", 1)))
    except Exception:  # e.g. interpret mode on CPU
        return 1


def _choose_batch_tile(batch, batch_tile, num_cores):
    """Per-grid-step batch tile (rows)."""
    if batch <= batch_tile and (num_cores <= 1 or batch < 16 * num_cores):
        return batch                       # one full-extent tile (v5e/v6e path)
    if num_cores > 1:
        per_core = pl.cdiv(batch, num_cores)
        bt = min(batch_tile, _round_up(per_core, 16))
    else:
        bt = batch_tile
    return min(_round_up(bt, 16), _round_up(batch, 16))


# ---------------------------------------------------------------------------
# Forward wrapper
# ---------------------------------------------------------------------------
def discrete_policy_forward(x, prepared, *, batch_tile=1024, num_cores=None):
    """Returns Categorical probabilities, shape [batch, action_dim] (f32)."""
    B, S = x.shape
    A = prepared["action_dim"]
    A_pad = prepared["action_dim_padded"]
    w1, b1 = prepared["w1"], prepared["b1"]
    w2, b2 = prepared["w2"], prepared["b2"]
    w3, b3 = prepared["w3"], prepared["b3"]

    if num_cores is None:
        num_cores = _default_num_cores()
    bt = _choose_batch_tile(B, batch_tile, num_cores)
    grid = (pl.cdiv(B, bt),)
    # Note: when B is not a multiple of bt, the out-of-range rows of the last
    # tile flow through exp/softmax on padded data; their stores are bounded,
    # so results are unaffected.

    kernel = functools.partial(_policy_kernel, action_dim=A)

    return pl.pallas_call(
        kernel,
        out_shape=jax.ShapeDtypeStruct((B, A), jnp.float32),
        grid_spec=pltpu.PrefetchScalarGridSpec(
            num_scalar_prefetch=0,
            grid=grid,
            in_specs=[
                pl.BlockSpec((bt, S), lambda i: (i, 0)),             # x tile (f32)
                pl.BlockSpec((S, HIDDEN1), lambda i: (0, 0)),        # W1 (bf16)
                pl.BlockSpec((1, HIDDEN1), lambda i: (0, 0)),        # b1
                pl.BlockSpec((HIDDEN1, HIDDEN2), lambda i: (0, 0)),  # W2 (bf16)
                pl.BlockSpec((1, HIDDEN2), lambda i: (0, 0)),        # b2
                pl.BlockSpec((HIDDEN2, A_pad), lambda i: (0, 0)),    # W3 (padded, bf16)
                pl.BlockSpec((1, A_pad), lambda i: (0, 0)),          # b3 (padded, masked)
            ],
            out_specs=pl.BlockSpec((bt, A), lambda i: (i, 0)),       # narrow store
        ),
        compiler_params=pltpu.CompilerParams(
            dimension_semantics=("parallel",)),
    )(x, w1, b1, w2, b2, w3, b3)


# ---------------------------------------------------------------------------
# Parameters / references / test
# ---------------------------------------------------------------------------
def init_params(key, state_dim, action_dim):
    """Deterministic synthetic parameters (Linear weights stored as [in, out])."""
    ks = jax.random.split(key, 6)

    def lin(kw, kb, fan_in, fan_out):
        bound = 1.0 / jnp.sqrt(fan_in)
        w = jax.random.uniform(kw, (fan_in, fan_out), jnp.float32, -bound, bound)
        b = jax.random.uniform(kb, (1, fan_out), jnp.float32, -bound, bound)
        return w, b

    w1, b1 = lin(ks[0], ks[1], state_dim, HIDDEN1)
    w2, b2 = lin(ks[2], ks[3], HIDDEN1, HIDDEN2)
    w3, b3 = lin(ks[4], ks[5], HIDDEN2, action_dim)
    return (w1, b1, w2, b2, w3, b3)


def _reference_forward_f32(x, params):
    """Pure f32 reference (matches the PyTorch module exactly)."""
    w1, b1, w2, b2, w3, b3 = params
    h1 = jnp.maximum(x @ w1 + b1, 0.0)
    h2 = jnp.maximum(h1 @ w2 + b2, 0.0)
    logits = h2 @ w3 + b3
    return jax.nn.softmax(logits, axis=-1)


def _reference_forward_bf16(x, params):
    """Reference mirroring the kernel's bf16-matmul / f32-accumulate scheme."""
    w1, b1, w2, b2, w3, b3 = params
    bf = jnp.bfloat16
    h1 = jnp.dot(x.astype(bf), w1.astype(bf), preferred_element_type=jnp.float32)
    h1 = jnp.maximum(h1 + b1, 0.0)
    h2 = jnp.dot(h1.astype(bf), w2.astype(bf), preferred_element_type=jnp.float32)
    h2 = jnp.maximum(h2 + b2, 0.0)
    logits = jnp.dot(h2.astype(bf), w3.astype(bf),
                     preferred_element_type=jnp.float32) + b3
    return jax.nn.softmax(logits, axis=-1)


if __name__ == "__main__":
    key = jax.random.PRNGKey(0)
    k_param, k_x = jax.random.split(key)

    batch, state_dim, action_dim = 8, 32, 8
    params = init_params(k_param, state_dim, action_dim)
    prepared = prepare_params(params)
    x = jax.random.normal(k_x, (batch, state_dim), jnp.float32)

    probs = discrete_policy_forward(x, prepared)
    probs = jax.block_until_ready(probs)

    ref_bf16 = _reference_forward_bf16(x, params)
    ref_f32 = _reference_forward_f32(x, params)

    assert probs.shape == (batch, action_dim)
    assert not bool(jnp.any(jnp.isnan(probs)))
    # exact divide -> rows sum to 1 within f32 rounding
    assert jnp.allclose(jnp.sum(probs, axis=-1), 1.0, atol=1e-3)
    # check vs. a reference that mirrors the kernel's bf16 matmuls
    assert jnp.allclose(probs, ref_bf16, atol=2e-3, rtol=2e-3)
    # loose check vs. the exact f32 PyTorch-equivalent forward
    assert jnp.allclose(probs, ref_f32, atol=2e-2, rtol=2e-2)

    print("KERNEL_OK")
</pallas_src>

<mosaic_0001>
module attributes {stable_mosaic.version = 11 : i64} {
  func.func @_policy_kernel(%arg0: i32, %arg1: memref<8x32xf32, #tpu.memory_space<vmem>>, %arg2: memref<32x128xbf16, #tpu.memory_space<vmem>>, %arg3: memref<1x128xf32, #tpu.memory_space<vmem>>, %arg4: memref<128x256xbf16, #tpu.memory_space<vmem>>, %arg5: memref<1x256xf32, #tpu.memory_space<vmem>>, %arg6: memref<256x128xbf16, #tpu.memory_space<vmem>>, %arg7: memref<1x128xf32, #tpu.memory_space<vmem>>, %arg8: memref<8x8xf32, #tpu.memory_space<vmem>>) attributes {dimension_semantics = [#tpu.dimension_semantics<parallel>], iteration_bounds = array<i64: 1>, scalar_prefetch = 0 : i64, scratch_operands = 0 : i64, tpu.core_type = #tpu.core_type<tc>, window_params = [{transform_indices = @transform_0, window_bounds = array<i64: 8, 32>}, {pipeline_mode = #tpu.pipeline_mode<synchronous>, transform_indices = @transform_1, window_bounds = array<i64: 32, 128>}, {pipeline_mode = #tpu.pipeline_mode<synchronous>, transform_indices = @transform_2, window_bounds = array<i64: 1, 128>}, {pipeline_mode = #tpu.pipeline_mode<synchronous>, transform_indices = @transform_3, window_bounds = array<i64: 128, 256>}, {pipeline_mode = #tpu.pipeline_mode<synchronous>, transform_indices = @transform_4, window_bounds = array<i64: 1, 256>}, {pipeline_mode = #tpu.pipeline_mode<synchronous>, transform_indices = @transform_5, window_bounds = array<i64: 256, 128>}, {pipeline_mode = #tpu.pipeline_mode<synchronous>, transform_indices = @transform_6, window_bounds = array<i64: 1, 128>}, {transform_indices = @transform_7, window_bounds = array<i64: 8, 8>}]} {
    %c0 = arith.constant 0 : index
    %c0_0 = arith.constant 0 : index
    %0 = vector.load %arg1[%c0, %c0_0] : memref<8x32xf32, #tpu.memory_space<vmem>>, vector<8x32xf32>
    %1 = arith.truncf %0 : vector<8x32xf32> to vector<8x32xbf16>
    %c0_1 = arith.constant 0 : index
    %c0_2 = arith.constant 0 : index
    %2 = vector.load %arg2[%c0_1, %c0_2] : memref<32x128xbf16, #tpu.memory_space<vmem>>, vector<32x128xbf16>
    %cst = arith.constant dense<0.000000e+00> : vector<8x128xf32>
    %3 = tpu.matmul %1, %2, %cst {dimension_numbers = #tpu.dot_dimension_numbers<[1], [0], [0], [1], [0, 0, 1, 1], [], []>} : vector<8x32xbf16>, vector<32x128xbf16>, vector<8x128xf32> -> vector<8x128xf32>
    %c0_3 = arith.constant 0 : index
    %c0_4 = arith.constant 0 : index
    %4 = vector.load %arg3[%c0_3, %c0_4] : memref<1x128xf32, #tpu.memory_space<vmem>>, vector<1x128xf32>
    %5 = vector.broadcast %4 : vector<1x128xf32> to vector<8x128xf32>
    %6 = arith.addf %3, %5 : vector<8x128xf32>
    %cst_5 = arith.constant 0.000000e+00 : f32
    %7 = vector.broadcast %cst_5 : f32 to vector<8x128xf32>
    %8 = arith.maximumf %6, %7 : vector<8x128xf32>
    %9 = arith.truncf %8 : vector<8x128xf32> to vector<8x128xbf16>
    %c0_6 = arith.constant 0 : index
    %c0_7 = arith.constant 0 : index
    %10 = vector.load %arg4[%c0_6, %c0_7] : memref<128x256xbf16, #tpu.memory_space<vmem>>, vector<128x256xbf16>
    %cst_8 = arith.constant dense<0.000000e+00> : vector<8x256xf32>
    %11 = tpu.matmul %9, %10, %cst_8 {dimension_numbers = #tpu.dot_dimension_numbers<[1], [0], [0], [1], [0, 0, 1, 1], [], []>} : vector<8x128xbf16>, vector<128x256xbf16>, vector<8x256xf32> -> vector<8x256xf32>
    %c0_9 = arith.constant 0 : index
    %c0_10 = arith.constant 0 : index
    %12 = vector.load %arg5[%c0_9, %c0_10] : memref<1x256xf32, #tpu.memory_space<vmem>>, vector<1x256xf32>
    %13 = vector.broadcast %12 : vector<1x256xf32> to vector<8x256xf32>
    %14 = arith.addf %11, %13 : vector<8x256xf32>
    %cst_11 = arith.constant 0.000000e+00 : f32
    %15 = vector.broadcast %cst_11 : f32 to vector<8x256xf32>
    %16 = arith.maximumf %14, %15 : vector<8x256xf32>
    %17 = arith.truncf %16 : vector<8x256xf32> to vector<8x256xbf16>
    %c0_12 = arith.constant 0 : index
    %c0_13 = arith.constant 0 : index
    %18 = vector.load %arg6[%c0_12, %c0_13] : memref<256x128xbf16, #tpu.memory_space<vmem>>, vector<256x128xbf16>
    %cst_14 = arith.constant dense<0.000000e+00> : vector<8x128xf32>
    %19 = tpu.matmul %17, %18, %cst_14 {dimension_numbers = #tpu.dot_dimension_numbers<[1], [0], [0], [1], [0, 0, 1, 1], [], []>} : vector<8x256xbf16>, vector<256x128xbf16>, vector<8x128xf32> -> vector<8x128xf32>
    %c0_15 = arith.constant 0 : index
    %c0_16 = arith.constant 0 : index
    %20 = vector.load %arg7[%c0_15, %c0_16] : memref<1x128xf32, #tpu.memory_space<vmem>>, vector<1x128xf32>
    %21 = vector.broadcast %20 : vector<1x128xf32> to vector<8x128xf32>
    %22 = arith.addf %19, %21 : vector<8x128xf32>
    %cst_17 = arith.constant dense<0xFF800000> : vector<8xf32>
    %23 = vector.multi_reduction <maximumf>, %22, %cst_17 [1] : vector<8x128xf32> to vector<8xf32>
    %24 = vector.shape_cast %23 : vector<8xf32> to vector<8x1xf32>
    %25 = vector.broadcast %24 : vector<8x1xf32> to vector<8x128xf32>
    %26 = arith.subf %22, %25 : vector<8x128xf32>
    %27 = math.exp %26 : vector<8x128xf32>
    %cst_18 = arith.constant dense<0.000000e+00> : vector<8xf32>
    %28 = vector.multi_reduction <add>, %27, %cst_18 [1] : vector<8x128xf32> to vector<8xf32>
    %29 = vector.shape_cast %28 : vector<8xf32> to vector<8x1xf32>
    %30 = vector.broadcast %29 : vector<8x1xf32> to vector<8x128xf32>
    %31 = arith.divf %27, %30 : vector<8x128xf32>
    %32 = vector.extract_strided_slice %31 {offsets = [0, 0], sizes = [8, 8], strides = [1, 1]} : vector<8x128xf32> to vector<8x8xf32>
    %c0_19 = arith.constant 0 : index
    %c0_20 = arith.constant 0 : index
    %33 = vector.load %arg8[%c0_19, %c0_20] : memref<8x8xf32, #tpu.memory_space<vmem>>, vector<8x8xf32>
    tpu.vector_store %arg8[%c0_19, %c0_20], %32 {strides = array<i32>} : memref<8x8xf32, #tpu.memory_space<vmem>>, vector<8x8xf32>,
    return
  }
  func.func @transform_0(%arg0: i32) -> (i32, i32) {
    %c0_i32 = arith.constant 0 : i32
    %c0_i32_0 = arith.constant 0 : i32
    return %arg0, %c0_i32 : i32, i32
  }
  func.func @transform_1(%arg0: i32) -> (i32, i32) {
    %c0_i32 = arith.constant 0 : i32
    %c0_i32_0 = arith.constant 0 : i32
    %c0_i32_1 = arith.constant 0 : i32
    return %c0_i32, %c0_i32_0 : i32, i32
  }
  func.func @transform_2(%arg0: i32) -> (i32, i32) {
    %c0_i32 = arith.constant 0 : i32
    %c0_i32_0 = arith.constant 0 : i32
    %c0_i32_1 = arith.constant 0 : i32
    return %c0_i32, %c0_i32_0 : i32, i32
  }
  func.func @transform_3(%arg0: i32) -> (i32, i32) {
    %c0_i32 = arith.constant 0 : i32
    %c0_i32_0 = arith.constant 0 : i32
    %c0_i32_1 = arith.constant 0 : i32
    return %c0_i32, %c0_i32_0 : i32, i32
  }
  func.func @transform_4(%arg0: i32) -> (i32, i32) {
    %c0_i32 = arith.constant 0 : i32
    %c0_i32_0 = arith.constant 0 : i32
    %c0_i32_1 = arith.constant 0 : i32
    return %c0_i32, %c0_i32_0 : i32, i32
  }
  func.func @transform_5(%arg0: i32) -> (i32, i32) {
    %c0_i32 = arith.constant 0 : i32
    %c0_i32_0 = arith.constant 0 : i32
    %c0_i32_1 = arith.constant 0 : i32
    return %c0_i32, %c0_i32_0 : i32, i32
  }
  func.func @transform_6(%arg0: i32) -> (i32, i32) {
    %c0_i32 = arith.constant 0 : i32
    %c0_i32_0 = arith.constant 0 : i32
    %c0_i32_1 = arith.constant 0 : i32
    return %c0_i32, %c0_i32_0 : i32, i32
  }
  func.func @transform_7(%arg0: i32) -> (i32, i32) {
    %c0_i32 = arith.constant 0 : i32
    %c0_i32_0 = arith.constant 0 : i32
    return %arg0, %c0_i32 : i32, i32
  }
}

</mosaic_0001>

<bundles_post_ra>
// kernel: tpu_custom_call.1
= control target key start
LH: loop header
LB: loop body
LE: loop exit
PB: predicated region body
PF: predicated region fallthrough
CT: control target
= control target key end

     0   :  { %12 = vsyncpa [#allocation3], 0  ;;  %s881_s0 = inlined_call_operand.hbm [shape: f32[8,32], index: 0, kind: input, shape index: {}]   ;;  %s882_s1 = inlined_call_operand.hbm [shape: bf16[32,128], index: 1, kind: input, shape index: {}]   ;;  %s883_s2 = inlined_call_operand.vmem [shape: f32[1,128], index: 2, kind: input, shape index: {}]   ;;  %s884_s3 = inlined_call_operand.hbm [shape: bf16[128,256], index: 3, kind: input, shape index: {}]   ;;  %s885_s4 = inlined_call_operand.vmem [shape: f32[1,256], index: 4, kind: input, shape index: {}]   ;;  %s886_s5 = inlined_call_operand.hbm [shape: bf16[256,128], index: 5, kind: input, shape index: {}]   ;;  %s887_s6 = inlined_call_operand.vmem [shape: f32[1,128], index: 6, kind: input, shape index: {}]   ;;  %s888_s7 = inlined_call_operand.hbm [shape: f32[8,8], index: 7, kind: output, shape index: {}]  }
   0x1   :  { %13 = vsyncpa [#allocation6], 0 }
   0x2   :  { %14 = vsyncpa [#allocation9], 0 }
   0x3   :  { %15 = vsyncpa [#allocation4], 0  ;;  %s754_s24 = smov [#allocation5]   ;;  %s636_s28 = scalar_lea.hbm %s882_s1, 256 }
   0x4   :  { %s31_s25 = sshll.u32 %s754_s24, 4  ;;  %p637_p0 = scmp.ne.s32.totalorder %s882_s1, %s636_s28  ;;  %s32_s25 = int_to_ptr.vmem [resolvable:$true] %s31_s25 }
   0x5   :  { %p640_p1 = scmp.lt.u32.totalorder %s636_s28, %s882_s1 }
   0x7   :  { %p642_p2 = pnand %p640_p1, %p637_p0 }
   0x9   :  { %645 = shalt.err (!%p642_p2)
}
   0xa   :  { %s646_s10 = scalar_lea.vmem %s32_s25, 256  ;;  %p651_p4 = scmp.lt.s32.totalorder %s32_s25, %s32_s25 }
   0xb   :  { %p647_p3 = scmp.ne.s32.totalorder %s32_s25, %s646_s10  ;;  %p652_p5 = scmp.lt.s32.totalorder %s646_s10, %s646_s10 }
   0xd   :  { %p653_p6 = por %p652_p5, %p651_p4 }
   0xf   :  { %p654_p7 = pnand %p653_p6, %p647_p3 }
  0x11   :  { %657 = shalt.err (!%p654_p7)
}
  0x12   :  { %s755_s11 = smov 64   ;;  %s756_s12 = smov 4  }
  0x13   :  { %37 = dma.hbm_to_vmem [thread:$0]  %s882_s1, 256, %s32_s25, [#allocation6], %s755_s11, %s755_s11, %s756_s12  }
  0x14   :  { %s757_s15 = smov [#allocation2]   ;;  %s758_s17 = smov [#allocation7]  }
  0x15   :  { %s22_s16 = sshll.u32 %s757_s15, 4  ;;  %s45_s18 = sshll.u32 %s758_s17, 4  ;;  %s23_s16 = int_to_ptr.vmem [resolvable:$true] %s22_s16  ;;  %s46_s18 = int_to_ptr.vmem [resolvable:$true] %s45_s18 }
  0x16   :  { %s658_s21 = scalar_lea.hbm %s881_s0, 128 }
  0x17   :  { %p659_p8 = scmp.ne.s32.totalorder %s881_s0, %s658_s21  ;;  %p662_p9 = scmp.lt.u32.totalorder %s658_s21, %s881_s0 }
  0x19   :  { %p664_p10 = pnand %p662_p9, %p659_p8 }
  0x1b   :  { %667 = shalt.err (!%p664_p10)
}
  0x1c   :  { %s668_s1 = scalar_lea.vmem %s23_s16, 128  ;;  %p673_p12 = scmp.lt.s32.totalorder %s23_s16, %s23_s16 }
  0x1d   :  { %p669_p11 = scmp.ne.s32.totalorder %s23_s16, %s668_s1  ;;  %p674_p13 = scmp.lt.s32.totalorder %s668_s1, %s668_s1 }
  0x1f   :  { %p675_p0 = por %p674_p13, %p673_p12 }
  0x21   :  { %p676_p1 = pnand %p675_p0, %p669_p11 }
  0x23   :  { %679 = shalt.err (!%p676_p1)
}
  0x24   :  { %25 = dma.hbm_to_vmem [thread:$0]  %s881_s0, 128, %s23_s16, [#allocation3]  }
  0x25   :  { %s680_s30 = scalar_lea.hbm %s884_s3, 2048 }
  0x26   :  { %p681_p2 = scmp.ne.s32.totalorder %s884_s3, %s680_s30  ;;  %p684_p3 = scmp.lt.u32.totalorder %s680_s30, %s884_s3 }
  0x28   :  { %p686_p4 = pnand %p684_p3, %p681_p2 }
  0x2a   :  { %689 = shalt.err (!%p686_p4)
}
  0x2b   :  { %s690_s14 = scalar_lea.vmem %s46_s18, 2048  ;;  %p695_p6 = scmp.lt.s32.totalorder %s46_s18, %s46_s18 }
  0x2c   :  { %p691_p5 = scmp.ne.s32.totalorder %s46_s18, %s690_s14  ;;  %p696_p7 = scmp.lt.s32.totalorder %s690_s14, %s690_s14 }
  0x2e   :  { %p697_p8 = por %p696_p7, %p695_p6 }
  0x30   :  { %p698_p9 = pnand %p697_p8, %p691_p5 }
  0x32   :  { %701 = shalt.err (!%p698_p9)
}
  0x33   :  { %s759_s0 = smov 128   ;;  %s760_s15 = smov 8  }
  0x34   :  { %51 = dma.hbm_to_vmem [thread:$0]  %s884_s3, 2048, %s46_s18, [#allocation6], %s759_s0, %s759_s0, %s760_s15  }
  0x35   :  { %s761_s19 = smov [#allocation8]   ;;  %s702_s23 = scalar_lea.hbm %s886_s5, 2048 }
  0x36   :  { %s59_s20 = sshll.u32 %s761_s19, 4  ;;  %p703_p10 = scmp.ne.s32.totalorder %s886_s5, %s702_s23  ;;  %s60_s20 = int_to_ptr.vmem [resolvable:$true] %s59_s20 }
  0x37   :  { %p706_p11 = scmp.lt.u32.totalorder %s702_s23, %s886_s5 }
  0x39   :  { %p708_p12 = pnand %p706_p11, %p703_p10 }
  0x3b   :  { %711 = shalt.err (!%p708_p12)
}
  0x3c   :  { %s712_s27 = scalar_lea.vmem %s60_s20, 2048  ;;  %p717_p0 = scmp.lt.s32.totalorder %s60_s20, %s60_s20 }
  0x3d   :  { %p713_p13 = scmp.ne.s32.totalorder %s60_s20, %s712_s27  ;;  %p718_p1 = scmp.lt.s32.totalorder %s712_s27, %s712_s27 }
  0x3f   :  { %p719_p2 = por %p718_p1, %p717_p0 }
  0x41   :  { %p720_p3 = pnand %p719_p2, %p713_p13 }
  0x43   :  { %723 = shalt.err (!%p720_p3)
}
  0x44   :  { %65 = dma.hbm_to_vmem [thread:$0]  %s886_s5, 2048, %s60_s20, [#allocation9], %s755_s11, %s755_s11, %s756_s12  }
  0x45   :  { %746 = dma.done.wait [#allocation3], 128  }
  0x46   :  { %747 = vsyncadd [#allocation3], 4294967168 }
  0x47   :  { %748 = dma.done.wait [#allocation6], 2304  }
  0x48   :  { %749 = vsyncadd [#allocation6], 4294964992 }
  0x49   :  { %750 = dma.done.wait [#allocation9], 2048  }
  0x4a   :  { %751 = vsyncadd [#allocation9], 4294965248  ;;  %v762_v0 = vmov 0.0   ;;  %vm763_vm0 = vmmov 0   ;;  %v590_v1 = vld [vmem:[#allocation5] sm:$0xff]   ;;  %v591_v2 = vld [vmem:[#allocation5 + $0x8] sm:$0xff]   ;;  %v170_v46 = vlaneseq }
  0x4b   :  { %570 = vmatprep.subr.bf16.mxu0 %v762_v0  ;;  %574 = vmatprep.mubr.msk.bf16.mxu0 %vm763_vm0, %v762_v0  ;;  %v81_v3 = vld [vmem:[#allocation2] sm:$0xff]  ;;  %v595_v6 = vld [vmem:[#allocation7 + $0x14] ss:$8 sps:$4 sm:$0xff]   ;;  %vm106_vm1 = vcmask 261120   ;;  %v597_v8 = vld [vmem:[#allocation7 + $0x10] ss:$8 sps:$4 sm:$0xff]  }
  0x4c   :  { %571 = vmatpush3.bf16.msra.mxu0 %v590_v1  ;;  %v592_v4 = vld [vmem:[#allocation7 + $0x4] ss:$8 sps:$4 sm:$0xff]   ;;  %v594_v5 = vld [vmem:[#allocation7] ss:$8 sps:$4 sm:$0xff]   ;;  %v82_v7 = vpack.c.bf16 %v81_v3, %v81_v3  ;;  %v601_v11 = vld [vmem:[#allocation7 + $0x34] ss:$8 sps:$4 sm:$0xff]  }
  0x4d   :  { %572 = vmatprep.subr.bf16.mxu0 %v762_v0  ;;  %260 = vmatprep.subr.bf16.mxu1 %v592_v4  ;;  %v598_v9 = vld [vmem:[#allocation7 + $0x24] ss:$8 sps:$4 sm:$0xff]   ;;  %v600_v10 = vld [vmem:[#allocation7 + $0x20] ss:$8 sps:$4 sm:$0xff]   ;;  %v603_v12 = vld [vmem:[#allocation7 + $0x30] ss:$8 sps:$4 sm:$0xff]  }
  0x4e   :  { %261 = vmatpush1.bf16.msra.mxu1 %v594_v5  ;;  %v604_v13 = vld [vmem:[#allocation7 + $0x44] ss:$8 sps:$4 sm:$0xff]   ;;  %v606_v14 = vld [vmem:[#allocation7 + $0x40] ss:$8 sps:$4 sm:$0xff]   ;;  %v607_v15 = vld [vmem:[#allocation7 + $0x54] ss:$8 sps:$4 sm:$0xff]  }
  0x4f   :  { %262 = vmatprep.subr.bf16.mxu1 %v595_v6  ;;  %v609_v16 = vld [vmem:[#allocation7 + $0x50] ss:$8 sps:$4 sm:$0xff]   ;;  %v610_v17 = vld [vmem:[#allocation7 + $0x64] ss:$8 sps:$4 sm:$0xff]   ;;  %v612_v18 = vld [vmem:[#allocation7 + $0x60] ss:$8 sps:$4 sm:$0xff]  }
  0x50   :  { %573 = vmatpush3.bf16.msra.mxu0 %v591_v2  ;;  %v613_v19 = vld [vmem:[#allocation7 + $0x74] ss:$8 sps:$4 sm:$0xff]   ;;  %v615_v20 = vld [vmem:[#allocation7 + $0x70] ss:$8 sps:$4 sm:$0xff]   ;;  %v764_v21 = vmov 0   ;;  %v616_v22 = vld [vmem:[#allocation8 + $0x40] sm:$0xff]  }
  0x51   :  { %292 = vmatprep.mubr.bf16.mxu1 %v764_v21  ;;  %v617_v23 = vld [vmem:[#allocation8] sm:$0xff]   ;;  %v618_v24 = vld [vmem:[#allocation8 + $0x48] sm:$0xff]   ;;  %548 = vmatprep.subr.bf16.mxu0 %v616_v22  ;;  %v620_v26 = vld [vmem:[#allocation8 + $0x50] sm:$0xff]   ;;  %v171_v47 = vshrl.u32 %v170_v46, 7  ;;  %vm489_vm2 = vcmask 64512  }
  0x52   :  { %263 = vmatpush1.bf16.msra.mxu1 %v597_v8  ;;  %v619_v25 = vld [vmem:[#allocation8 + $0x8] sm:$0xff]   ;;  %v621_v27 = vld [vmem:[#allocation8 + $0x10] sm:$0xff]   ;;  %v622_v28 = vld [vmem:[#allocation8 + $0x58] sm:$0xff]  }
  0x53   :  { %575 = vmatmul.mubr.msk.bf16.vlgmr.msra.gmra.mrb[0].mxu0 %vm106_vm1, %v82_v7  ;;  %264 = vmatprep.subr.bf16.mxu1 %v598_v9  ;;  %v623_v29 = vld [vmem:[#allocation8 + $0x18] sm:$0xff]   ;;  %v624_v30 = vld [vmem:[#allocation8 + $0x60] sm:$0xff]   ;;  %v626_v32 = vld [vmem:[#allocation8 + $0x68] sm:$0xff]   ;;  %v172_v48 = vsub.s32 0, %v171_v47  ;;  %v176_v50 = vsub.s32 1, %v171_v47 }
  0x54   :  { %549 = vmatpush3.bf16.msra.mxu0 %v617_v23  ;;  %v625_v31 = vld [vmem:[#allocation8 + $0x20] sm:$0xff]   ;;  %v627_v33 = vld [vmem:[#allocation8 + $0x28] sm:$0xff]   ;;  %v628_v42 = vld [vmem:[#allocation8 + $0x70] sm:$0xff]  }
  0x55   :  { %550 = vmatprep.subr.bf16.mxu0 %v618_v24  ;;  %v508_v34 = vld [vmem:[%s883_s2] ss:$0 sm:$0xff]  ;;  %v629_v43 = vld [vmem:[#allocation8 + $0x30] sm:$0xff]   ;;  %v630_v44 = vld [vmem:[#allocation8 + $0x78] sm:$0xff]  }
  0x56   :  { %265 = vmatpush1.bf16.msra.mxu1 %v600_v10  ;;  %v631_v45 = vld [vmem:[#allocation8 + $0x38] sm:$0xff]   ;;  %v168_v49 = vld [vmem:[%s885_s4] sm:$0x3]  ;;  %s765_s4 = smov [#allocation10]  }
  0x57   :  { %266 = vmatprep.subr.bf16.mxu1 %v601_v11  ;;  %v173_v51 = vrot.slane %v168_v49, %v172_v48  ;;  %v177_v52 = vrot.slane %v168_v49, %v176_v50  ;;  %v528_v1 = vld [vmem:[%s887_s6] ss:$0 sm:$0xff]  ;;  %s497_s30 = sshll.u32 %s765_s4, 4  ;;  %s498_s30 = int_to_ptr.vmem [resolvable:$true] %s497_s30 }
  0x58   :  { %551 = vmatpush3.bf16.msra.mxu0 %v619_v25  ;;  %s724_s6 = scalar_lea.vmem %s498_s30, 128  ;;  %p729_p5 = scmp.lt.s32.totalorder %s498_s30, %s498_s30 }
  0x59   :  { %552 = vmatprep.subr.bf16.mxu0 %v620_v26  ;;  %p725_p4 = scmp.ne.s32.totalorder %s498_s30, %s724_s6  ;;  %p730_p6 = scmp.lt.s32.totalorder %s724_s6, %s724_s6 }
  0x5a   :  { %267 = vmatpush1.bf16.msra.mxu1 %v603_v12 }
  0x5b   :  { %268 = vmatprep.subr.bf16.mxu1 %v604_v13  ;;  %p731_p7 = por %p730_p6, %p729_p5 }
  0x5c   :  { %553 = vmatpush3.bf16.msra.mxu0 %v621_v27 }
  0x5d   :  { %554 = vmatprep.subr.bf16.mxu0 %v622_v28  ;;  %p732_p8 = pnand %p731_p7, %p725_p4 }
  0x5e   :  { %269 = vmatpush1.bf16.msra.mxu1 %v606_v14 }
  0x5f   :  { %270 = vmatprep.subr.bf16.mxu1 %v607_v15 }
  0x60   :  { %555 = vmatpush3.bf16.msra.mxu0 %v623_v29 }
  0x61   :  { %556 = vmatprep.subr.bf16.mxu0 %v624_v30 }
  0x62   :  { %271 = vmatpush1.bf16.msra.mxu1 %v609_v16 }
  0x63   :  { %272 = vmatprep.subr.bf16.mxu1 %v610_v17 }
  0x64   :  { %557 = vmatpush3.bf16.msra.mxu0 %v625_v31 }
  0x65   :  { %558 = vmatprep.subr.bf16.mxu0 %v626_v32 }
  0x66   :  { %273 = vmatpush1.bf16.msra.mxu1 %v612_v18 }
  0x67   :  { %274 = vmatprep.subr.bf16.mxu1 %v613_v19 }
  0x68   :  { %559 = vmatpush3.bf16.msra.mxu0 %v627_v33 }
  0x69   :  { %560 = vmatprep.subr.bf16.mxu0 %v628_v42 }
  0x6a   :  { %275 = vmatpush1.bf16.msra.mxu1 %v615_v20 }
  0x6c   :  { %561 = vmatpush3.bf16.msra.mxu0 %v629_v43 }
  0x6d   :  { %562 = vmatprep.subr.bf16.mxu0 %v630_v44 }
  0x70   :  { %563 = vmatpush3.bf16.msra.mxu0 %v631_v45 }
 0x126   :  { %v144_v35 = vpop.f32.mrb[0].mxu0 }
 0x127   :  { %v145_v36 = vadd.f32 %v508_v34, %v144_v35  ;;  %v576_v37 = vpop.f32.mrb[1].mxu0 }
 0x128   :  { %v147_v38 = vpop.f32.mrb[2].mxu0 }
 0x129   :  { %v150_v39 = vmax.f32 %v145_v36, 0.0  ;;  %v577_v40 = vpop.f32.mrb[3].mxu0 }
 0x12b   :  { %v151_v41 = vpack.c.bf16 %v150_v39, %v150_v39 }
 0x12d   :  { %293 = vmatmul.mubr.bf16.vlgmr.msra.gmra.mrb[0].mxu1 %v151_v41 }
 0x200   :  { %v294_v53 = vpop.f32.mrb[0].mxu1 }
 0x201   :  { %v295_v54 = vadd.f32 %v294_v53, %v173_v51  ;;  %v296_v55 = vpop.f32.mrb[1].mxu1 }
 0x202   :  { %v297_v56 = vadd.f32 %v296_v55, %v177_v52  ;;  %v298_v57 = vpop.f32.mrb[2].mxu1 }
 0x203   :  { %v301_v58 = vmax.f32 %v295_v54, 0.0  ;;  %v299_v59 = vpop.f32.mrb[3].mxu1 }
 0x204   :  { %v302_v60 = vmax.f32 %v297_v56, 0.0 }
 0x205   :  { %v303_v62 = vpack.c.bf16 %v301_v58, %v301_v58 }
 0x206   :  { %v304_v61 = vpack.c.bf16 %v302_v60, %v302_v60 }
 0x208   :  { %472 = vmatprep.mubr.bf16.mxu0 %v304_v61 }
 0x209   :  { %473 = vmatmul.mubr.bf16.vlgmr.msra.gmra.mrb[4].mxu0 %v303_v62 }
 0x2dc   :  { %v564_v63 = vpop.f32.mrb[4].mxu0 }
 0x2dd   :  { %v565_v0 = vpop.f32.mrb[5].mxu0 }
 0x2de   :  { %v566_v2 = vadd.f32 %v565_v0, %v564_v63  ;;  %v567_v3 = vpop.f32.mrb[6].mxu0 }
 0x2df   :  { %v568_v4 = vpop.f32.mrb[7].mxu0 }
 0x2e0   :  { %v475_v5 = vadd.f32 %v566_v2, %v528_v1 }
 0x2e2   :  { %480 = vmax.xlane.f32.xlu0 %v475_v5 }
 0x36f   :  { %v481_v6 = vpop.xlane.xlu0 %480 }
 0x370   :  { %v482_v7 = vsub.f32 %v475_v5, %v481_v6 }
 0x372   :  { %v483_v8 = vmul.f32 1.442695, %v482_v7 }
 0x374   :  { %632 = vpow2.f32 %v483_v8 }
 0x37e   :  { %v633_v9 = vpop.eup %632 }
 0x37f   :  { %485 = vadd.xlane.f32.xlu0 %v633_v9 }
 0x40c   :  { %v486_v10 = vpop.xlane.xlu0 %485 }
 0x40d   :  { %634 = vrcp.f32 %v486_v10 }
 0x417   :  { %v635_v11 = vpop.eup %634 }
 0x418   :  { %v488_v12 = vmul.f32 %v635_v11, %v633_v9 }
 0x41a   :  { %490 = vst.msk [vmem:[#allocation10] sm:$0xff] %vm489_vm2, %v488_v12 }
 0x41b   :  { %735 = shalt.err (!%p732_p8)
}
 0x41c   :  { %s736_s10 = scalar_lea.hbm %s888_s7, 128 }
 0x41d   :  { %p737_p9 = scmp.ne.s32.totalorder %s888_s7, %s736_s10  ;;  %p740_p10 = scmp.lt.u32.totalorder %s736_s10, %s888_s7 }
 0x41f   :  { %p742_p11 = pnand %p740_p10, %p737_p9 }
 0x421   :  { %745 = shalt.err (!%p742_p11)
}
 0x422   :  { %500 = dma.vmem_to_hbm [thread:$0]  %s498_s30, 128, %s888_s7, [#allocation4]  }
 0x423   :  { %752 = dma.done.wait [#allocation4], 128  }
 0x424   :  { %753 = vsyncadd [#allocation4], 4294967168 }
 0x425   :  { %504 = vsyncpa [#allocation3], 1 }
 0x426   :  { %505 = vsyncpa [#allocation6], 1 }
 0x427   :  { %506 = vsyncpa [#allocation9], 1 }
 0x428   :  { %507 = vsyncpa [#allocation4], 1 }

</bundles_post_ra>
